<compile_context>
chip_gen: v7x
topology: tpu7x:2x2x1
jax: 0.10.0
libtpu: 0.0.40
codegen_flags: <defaults>
</compile_context>

<pallas_src>
import functools

import jax
import jax.numpy as jnp
from jax.experimental import pallas as pl
from jax.experimental.pallas import tpu as pltpu

N = 62            # "n" from the script
IN_DIM = N - 1    # X.shape[1]  (61)
HIDDEN = 32       # "a" (undefined in the snippet; chosen deterministically)
ENC_DIM = 2
OUT_DIM = N - 1   # 61

HID_PAD = 128     # lane-dense hidden slab: h1 valid in cols [0:32], h2 in cols [32:64]
OUT_PAD = 128     # lane-dense fused-output slab: dec in cols [0:61], enc in cols [64:66]
ENC_COL = 64


def _round_up(x, m):
    return ((x + m - 1) // m) * m


def _sigmoid(z):
    # Single-transcendental sigmoid: 0.5 * tanh(0.5 * z) + 0.5 == 1 / (1 + exp(-z)).
    half = jnp.asarray(0.5, z.dtype)
    return half * jnp.tanh(half * z) + half


def autoencoder_kernel(x_ref,                # (TB, IN_DIM)  f32  (streamed)
                       w1_ref, b1_ref,       # (IN_DIM, HID_PAD) cd, (1, HID_PAD) f32
                       w23_ref, b23_ref,     # fused w2@w3 -> cols [32:64]: (HID_PAD, HID_PAD) cd, (1, HID_PAD) f32
                       wout_ref, bout_ref,   # stacked [w2 | w4]: (HID_PAD, OUT_PAD) cd, (1, OUT_PAD) f32
                       enc_ref, dec_ref):    # (TB, ENC_DIM) f32, (TB, OUT_DIM) f32
    cd = w1_ref.dtype                        # compute dtype for MXU / sigmoid (bf16 or f32)
    x = x_ref[...].astype(cd)                # (TB, IN_DIM): cast in-kernel, no wrapper pre-pass

    # encoder hidden layer: valid lanes [0:HIDDEN] of the 128-lane slab
    pre1 = (jnp.dot(x, w1_ref[...], preferred_element_type=jnp.float32)
            + b1_ref[...]).astype(cd)
    h1 = _sigmoid(pre1)                      # padded lanes hold sigmoid(0)=0.5

    # decoder hidden layer through the fused width-2 bottleneck:
    #   sigmoid(h1 @ (w2 @ w3) + (b2 @ w3 + b3)); valid lanes [HIDDEN:2*HIDDEN]
    pre2 = (jnp.dot(h1, w23_ref[...], preferred_element_type=jnp.float32)
            + b23_ref[...]).astype(cd)
    h2 = _sigmoid(pre2)

    # Pack h1 (lanes 0:32) and h2 (lanes 32:64) into one K=128 operand.
    # Explicitly zero the padded lanes (sigmoid(0)=0.5 would otherwise leak
    # into the output through the stacked weight).
    col = jax.lax.broadcasted_iota(jnp.int32, (1, HID_PAD), 1)
    m1 = (col < HIDDEN).astype(cd)
    m2 = ((col >= HIDDEN) & (col < 2 * HIDDEN)).astype(cd)
    hcat = h1 * m1 + h2 * m2                 # (TB, HID_PAD), cd

    # Single merged output matmul:
    #   cols [0:OUT_DIM]          -> decoded = h2 @ w4 + b4
    #   cols [ENC_COL:ENC_COL+2]  -> encoded = h1 @ w2 + b2
    slab = (jnp.dot(hcat, wout_ref[...], preferred_element_type=jnp.float32)
            + bout_ref[...])

    dec_ref[...] = slab[:, :OUT_DIM].astype(dec_ref.dtype)
    enc_ref[...] = slab[:, ENC_COL:ENC_COL + ENC_DIM].astype(enc_ref.dtype)


def prepare_params(params, compute_dtype=jnp.bfloat16):
    """Pad / pack / fuse the raw (in,out)-layout fp32 params for the kernel."""
    w1, b1, w2, b2, w3, b3, w4, b4 = params

    # Fuse the width-2 bottleneck on the decoder path (pure fp32 host math).
    w23 = w2 @ w3                 # (HIDDEN, HIDDEN)
    b23 = b2 @ w3 + b3            # (1, HIDDEN)

    # encoder hidden -> slab cols [0:HIDDEN]
    w1p = jnp.zeros((IN_DIM, HID_PAD), jnp.float32).at[:, :HIDDEN].set(w1)
    b1p = jnp.zeros((1, HID_PAD), jnp.float32).at[:, :HIDDEN].set(b1)

    # fused bottleneck maps h1 cols [0:HIDDEN] -> h2 cols [HIDDEN:2*HIDDEN]
    w23p = (jnp.zeros((HID_PAD, HID_PAD), jnp.float32)
            .at[:HIDDEN, HIDDEN:2 * HIDDEN].set(w23))
    b23p = jnp.zeros((1, HID_PAD), jnp.float32).at[:, HIDDEN:2 * HIDDEN].set(b23)

    # Row-stacked output weight for the merged matmul:
    #   rows [0:HIDDEN]          (h1 lanes) -> w2 into enc columns
    #   rows [HIDDEN:2*HIDDEN]   (h2 lanes) -> w4 into dec columns
    woutp = (jnp.zeros((HID_PAD, OUT_PAD), jnp.float32)
             .at[:HIDDEN, ENC_COL:ENC_COL + ENC_DIM].set(w2)
             .at[HIDDEN:2 * HIDDEN, :OUT_DIM].set(w4))
    boutp = (jnp.zeros((1, OUT_PAD), jnp.float32)
             .at[:, :OUT_DIM].set(b4)
             .at[:, ENC_COL:ENC_COL + ENC_DIM].set(b2))

    cd = compute_dtype
    return (w1p.astype(cd), b1p, w23p.astype(cd), b23p, woutp.astype(cd), boutp)


@functools.partial(jax.jit, static_argnames=("tile_rows",))
def autoencoder_forward(x, prepared, tile_rows=4096):
    """x: (B, IN_DIM) float32. Returns (encoded (B, 2), decoded (B, N-1)) fp32."""
    B = x.shape[0]
    w1p, b1p, w23p, b23p, woutp, boutp = prepared

    # Batch tile: multiple of 8 sublanes.  If the whole batch fits in one tile,
    # split it so the grid has >= 2 tiles where possible (v7x: both TCs work).
    rows8 = _round_up(B, 8)
    if rows8 <= tile_rows:
        TB = max(8, _round_up(pl.cdiv(B, 2), 8))
    else:
        TB = tile_rows
    num_tiles = pl.cdiv(B, TB)        # partial last tile handled by Pallas

    def resident(shape):
        # weights / biases: same block every grid step -> fetched once, stay in VMEM
        return pl.BlockSpec(shape, lambda i: (0, 0))

    # VMEM budget computed from actual (lane-padded, double-buffered) buffers.
    wbytes = jnp.dtype(w1p.dtype).itemsize
    stream_buf = TB * 128 * 4                          # f32 tile, minor dim lane-padded to 128
    vmem_bytes = (
        3 * 2 * stream_buf                             # x, dec, enc tiles, double-buffered
        + 2 * (64 * HID_PAD + HID_PAD * HID_PAD + HID_PAD * OUT_PAD) * wbytes  # resident weights
        + 2 * 3 * 8 * 128 * 4                          # resident bias tiles
        + (4 << 20)                                    # compiler scratch headroom
    )
    vmem_bytes = int(min(max(vmem_bytes, 8 << 20), 64 << 20))

    encoded, decoded = pl.pallas_call(
        autoencoder_kernel,
        out_shape=(jax.ShapeDtypeStruct((B, ENC_DIM), jnp.float32),
                   jax.ShapeDtypeStruct((B, OUT_DIM), jnp.float32)),
        grid_spec=pltpu.PrefetchScalarGridSpec(
            num_scalar_prefetch=0,
            grid=(num_tiles,),
            in_specs=[
                pl.BlockSpec((TB, IN_DIM), lambda i: (i, 0)),   # x tile (pipelined, unpadded)
                resident((IN_DIM, HID_PAD)),                    # w1
                resident((1, HID_PAD)),                         # b1
                resident((HID_PAD, HID_PAD)),                   # w23 (fused bottleneck)
                resident((1, HID_PAD)),                         # b23
                resident((HID_PAD, OUT_PAD)),                   # stacked [w2 | w4]
                resident((1, OUT_PAD)),                         # combined output bias
            ],
            out_specs=[
                pl.BlockSpec((TB, ENC_DIM), lambda i: (i, 0)),  # encoded (B, 2)
                pl.BlockSpec((TB, OUT_DIM), lambda i: (i, 0)),  # decoded (B, 61)
            ],
        ),
        compiler_params=pltpu.CompilerParams(
            dimension_semantics=("parallel",),        # shard batch tiles across TCs (v7x)
            vmem_limit_bytes=vmem_bytes,
        ),
    )(x, w1p, b1p, w23p, b23p, woutp, boutp)

    return encoded, decoded


def init_params(key):
    """Deterministic PyTorch-Linear-like init (uniform(-1/sqrt(in), 1/sqrt(in)))."""
    def linear(key, fan_in, fan_out):
        kw, kb = jax.random.split(key)
        bound = 1.0 / jnp.sqrt(jnp.float32(fan_in))
        # stored as (in, out) == W.T of the PyTorch (out, in) weight
        w = jax.random.uniform(kw, (fan_in, fan_out), jnp.float32, -bound, bound)
        b = jax.random.uniform(kb, (1, fan_out), jnp.float32, -bound, bound)
        return w, b

    k1, k2, k3, k4 = jax.random.split(key, 4)
    w1, b1 = linear(k1, IN_DIM, HIDDEN)
    w2, b2 = linear(k2, HIDDEN, ENC_DIM)
    w3, b3 = linear(k3, ENC_DIM, HIDDEN)
    w4, b4 = linear(k4, HIDDEN, OUT_DIM)
    return (w1, b1, w2, b2, w3, b3, w4, b4)


def reference_forward(x, params):
    """Pure-JAX fp32 reference, unfused / unpadded (matches the PyTorch module)."""
    w1, b1, w2, b2, w3, b3, w4, b4 = params
    h1 = jax.nn.sigmoid(x @ w1 + b1)
    enc = h1 @ w2 + b2
    h2 = jax.nn.sigmoid(enc @ w3 + b3)
    dec = h2 @ w4 + b4
    return enc, dec


if __name__ == "__main__":
    key = jax.random.PRNGKey(0)
    k_x, k_p = jax.random.split(key)

    batch = 8
    x = jax.random.normal(k_x, (batch, IN_DIM), jnp.float32)  # standardized features
    params = init_params(k_p)
    enc_ref, dec_ref = reference_forward(x, params)

    # fp32 compute path: tight match against the reference
    prep_f32 = prepare_params(params, compute_dtype=jnp.float32)
    enc32, dec32 = autoencoder_forward(x, prep_f32)
    jax.block_until_ready((enc32, dec32))
    assert enc32.shape == (batch, ENC_DIM) and dec32.shape == (batch, OUT_DIM)
    assert jnp.allclose(enc32, enc_ref, atol=1e-4, rtol=1e-4)
    assert jnp.allclose(dec32, dec_ref, atol=1e-4, rtol=1e-4)

    # bf16 matmul/sigmoid path (recommended on v6e/v7x): looser tolerance
    prep_bf16 = prepare_params(params, compute_dtype=jnp.bfloat16)
    enc16, dec16 = autoencoder_forward(x, prep_bf16)
    jax.block_until_ready((enc16, dec16))
    assert jnp.allclose(enc16, enc_ref, atol=5e-2, rtol=5e-2)
    assert jnp.allclose(dec16, dec_ref, atol=5e-2, rtol=5e-2)

    # ragged batch (exercises the partial last tile / multi-tile grid)
    x13 = jax.random.normal(k_x, (13, IN_DIM), jnp.float32)
    enc13, dec13 = autoencoder_forward(x13, prep_bf16)
    jax.block_until_ready((enc13, dec13))
    e13_ref, d13_ref = reference_forward(x13, params)
    assert enc13.shape == (13, ENC_DIM) and dec13.shape == (13, OUT_DIM)
    assert jnp.allclose(enc13, e13_ref, atol=5e-2, rtol=5e-2)
    assert jnp.allclose(dec13, d13_ref, atol=5e-2, rtol=5e-2)

    print("KERNEL_OK")
</pallas_src>

<mosaic_0001>
module attributes {stable_mosaic.version = 11 : i64} {
  func.func @autoencoder_kernel(%arg0: i32, %arg1: memref<8x61xf32, #tpu.memory_space<vmem>>, %arg2: memref<61x128xf32, #tpu.memory_space<vmem>>, %arg3: memref<1x128xf32, #tpu.memory_space<vmem>>, %arg4: memref<128x128xf32, #tpu.memory_space<vmem>>, %arg5: memref<1x128xf32, #tpu.memory_space<vmem>>, %arg6: memref<128x128xf32, #tpu.memory_space<vmem>>, %arg7: memref<1x128xf32, #tpu.memory_space<vmem>>, %arg8: memref<8x2xf32, #tpu.memory_space<vmem>>, %arg9: memref<8x61xf32, #tpu.memory_space<vmem>>) attributes {dimension_semantics = [#tpu.dimension_semantics<parallel>], iteration_bounds = array<i64: 1>, scalar_prefetch = 0 : i64, scratch_operands = 0 : i64, tpu.core_type = #tpu.core_type<tc>, window_params = [{transform_indices = @transform_0, window_bounds = array<i64: 8, 61>}, {pipeline_mode = #tpu.pipeline_mode<synchronous>, transform_indices = @transform_1, window_bounds = array<i64: 61, 128>}, {pipeline_mode = #tpu.pipeline_mode<synchronous>, transform_indices = @transform_2, window_bounds = array<i64: 1, 128>}, {pipeline_mode = #tpu.pipeline_mode<synchronous>, transform_indices = @transform_3, window_bounds = array<i64: 128, 128>}, {pipeline_mode = #tpu.pipeline_mode<synchronous>, transform_indices = @transform_4, window_bounds = array<i64: 1, 128>}, {pipeline_mode = #tpu.pipeline_mode<synchronous>, transform_indices = @transform_5, window_bounds = array<i64: 128, 128>}, {pipeline_mode = #tpu.pipeline_mode<synchronous>, transform_indices = @transform_6, window_bounds = array<i64: 1, 128>}, {transform_indices = @transform_7, window_bounds = array<i64: 8, 2>}, {transform_indices = @transform_8, window_bounds = array<i64: 8, 61>}]} {
    %c0 = arith.constant 0 : index
    %c0_0 = arith.constant 0 : index
    %0 = vector.load %arg1[%c0, %c0_0] : memref<8x61xf32, #tpu.memory_space<vmem>>, vector<8x61xf32>
    %c0_1 = arith.constant 0 : index
    %c0_2 = arith.constant 0 : index
    %1 = vector.load %arg2[%c0_1, %c0_2] : memref<61x128xf32, #tpu.memory_space<vmem>>, vector<61x128xf32>
    %cst = arith.constant dense<0.000000e+00> : vector<8x128xf32>
    %2 = tpu.matmul %0, %1, %cst {dimension_numbers = #tpu.dot_dimension_numbers<[1], [0], [0], [1], [0, 0, 1, 1], [], []>} : vector<8x61xf32>, vector<61x128xf32>, vector<8x128xf32> -> vector<8x128xf32>
    %c0_3 = arith.constant 0 : index
    %c0_4 = arith.constant 0 : index
    %3 = vector.load %arg3[%c0_3, %c0_4] : memref<1x128xf32, #tpu.memory_space<vmem>>, vector<1x128xf32>
    %4 = vector.broadcast %3 : vector<1x128xf32> to vector<8x128xf32>
    %5 = arith.addf %2, %4 : vector<8x128xf32>
    %cst_5 = arith.constant 5.000000e-01 : f32
    %6 = vector.broadcast %cst_5 : f32 to vector<8x128xf32>
    %7 = arith.mulf %6, %5 : vector<8x128xf32>
    %8 = math.tanh %7 : vector<8x128xf32>
    %cst_6 = arith.constant 5.000000e-01 : f32
    %9 = vector.broadcast %cst_6 : f32 to vector<8x128xf32>
    %10 = arith.mulf %9, %8 : vector<8x128xf32>
    %cst_7 = arith.constant 5.000000e-01 : f32
    %11 = vector.broadcast %cst_7 : f32 to vector<8x128xf32>
    %12 = arith.addf %10, %11 : vector<8x128xf32>
    %c0_8 = arith.constant 0 : index
    %c0_9 = arith.constant 0 : index
    %13 = vector.load %arg4[%c0_8, %c0_9] : memref<128x128xf32, #tpu.memory_space<vmem>>, vector<128x128xf32>
    %cst_10 = arith.constant dense<0.000000e+00> : vector<8x128xf32>
    %14 = tpu.matmul %12, %13, %cst_10 {dimension_numbers = #tpu.dot_dimension_numbers<[1], [0], [0], [1], [0, 0, 1, 1], [], []>} : vector<8x128xf32>, vector<128x128xf32>, vector<8x128xf32> -> vector<8x128xf32>
    %c0_11 = arith.constant 0 : index
    %c0_12 = arith.constant 0 : index
    %15 = vector.load %arg5[%c0_11, %c0_12] : memref<1x128xf32, #tpu.memory_space<vmem>>, vector<1x128xf32>
    %16 = vector.broadcast %15 : vector<1x128xf32> to vector<8x128xf32>
    %17 = arith.addf %14, %16 : vector<8x128xf32>
    %cst_13 = arith.constant 5.000000e-01 : f32
    %18 = vector.broadcast %cst_13 : f32 to vector<8x128xf32>
    %19 = arith.mulf %18, %17 : vector<8x128xf32>
    %20 = math.tanh %19 : vector<8x128xf32>
    %cst_14 = arith.constant 5.000000e-01 : f32
    %21 = vector.broadcast %cst_14 : f32 to vector<8x128xf32>
    %22 = arith.mulf %21, %20 : vector<8x128xf32>
    %cst_15 = arith.constant 5.000000e-01 : f32
    %23 = vector.broadcast %cst_15 : f32 to vector<8x128xf32>
    %24 = arith.addf %22, %23 : vector<8x128xf32>
    %25 = tpu.iota {dimensions = array<i32: 1>} : vector<1x128xi32>
    %c32_i32 = arith.constant 32 : i32
    %26 = vector.broadcast %c32_i32 : i32 to vector<1x128xi32>
    %27 = arith.cmpi slt, %25, %26 : vector<1x128xi32>
    %28 = arith.extui %27 : vector<1x128xi1> to vector<1x128xi32>
    %29 = arith.sitofp %28 : vector<1x128xi32> to vector<1x128xf32>
    %c32_i32_16 = arith.constant 32 : i32
    %30 = vector.broadcast %c32_i32_16 : i32 to vector<1x128xi32>
    %31 = arith.cmpi sge, %25, %30 : vector<1x128xi32>
    %c64_i32 = arith.constant 64 : i32
    %32 = vector.broadcast %c64_i32 : i32 to vector<1x128xi32>
    %33 = arith.cmpi slt, %25, %32 : vector<1x128xi32>
    %34 = arith.andi %31, %33 : vector<1x128xi1>
    %35 = arith.extui %34 : vector<1x128xi1> to vector<1x128xi32>
    %36 = arith.sitofp %35 : vector<1x128xi32> to vector<1x128xf32>
    %37 = vector.broadcast %29 : vector<1x128xf32> to vector<8x128xf32>
    %38 = arith.mulf %12, %37 : vector<8x128xf32>
    %39 = vector.broadcast %36 : vector<1x128xf32> to vector<8x128xf32>
    %40 = arith.mulf %24, %39 : vector<8x128xf32>
    %41 = arith.addf %38, %40 : vector<8x128xf32>
    %c0_17 = arith.constant 0 : index
    %c0_18 = arith.constant 0 : index
    %42 = vector.load %arg6[%c0_17, %c0_18] : memref<128x128xf32, #tpu.memory_space<vmem>>, vector<128x128xf32>
    %cst_19 = arith.constant dense<0.000000e+00> : vector<8x128xf32>
    %43 = tpu.matmul %41, %42, %cst_19 {dimension_numbers = #tpu.dot_dimension_numbers<[1], [0], [0], [1], [0, 0, 1, 1], [], []>} : vector<8x128xf32>, vector<128x128xf32>, vector<8x128xf32> -> vector<8x128xf32>
    %c0_20 = arith.constant 0 : index
    %c0_21 = arith.constant 0 : index
    %44 = vector.load %arg7[%c0_20, %c0_21] : memref<1x128xf32, #tpu.memory_space<vmem>>, vector<1x128xf32>
    %45 = vector.broadcast %44 : vector<1x128xf32> to vector<8x128xf32>
    %46 = arith.addf %43, %45 : vector<8x128xf32>
    %47 = vector.extract_strided_slice %46 {offsets = [0, 0], sizes = [8, 61], strides = [1, 1]} : vector<8x128xf32> to vector<8x61xf32>
    %c0_22 = arith.constant 0 : index
    %c0_23 = arith.constant 0 : index
    %48 = vector.load %arg9[%c0_22, %c0_23] : memref<8x61xf32, #tpu.memory_space<vmem>>, vector<8x61xf32>
    tpu.vector_store %arg9[%c0_22, %c0_23], %47 {strides = array<i32>} : memref<8x61xf32, #tpu.memory_space<vmem>>, vector<8x61xf32>,
    %49 = vector.extract_strided_slice %46 {offsets = [0, 64], sizes = [8, 2], strides = [1, 1]} : vector<8x128xf32> to vector<8x2xf32>
    %c0_24 = arith.constant 0 : index
    %c0_25 = arith.constant 0 : index
    %50 = vector.load %arg8[%c0_24, %c0_25] : memref<8x2xf32, #tpu.memory_space<vmem>>, vector<8x2xf32>
    tpu.vector_store %arg8[%c0_24, %c0_25], %49 {strides = array<i32>} : memref<8x2xf32, #tpu.memory_space<vmem>>, vector<8x2xf32>,
    return
  }
  func.func @transform_0(%arg0: i32) -> (i32, i32) {
    %c0_i32 = arith.constant 0 : i32
    %c0_i32_0 = arith.constant 0 : i32
    return %arg0, %c0_i32 : i32, i32
  }
  func.func @transform_1(%arg0: i32) -> (i32, i32) {
    %c0_i32 = arith.constant 0 : i32
    %c0_i32_0 = arith.constant 0 : i32
    %c0_i32_1 = arith.constant 0 : i32
    return %c0_i32, %c0_i32_0 : i32, i32
  }
  func.func @transform_2(%arg0: i32) -> (i32, i32) {
    %c0_i32 = arith.constant 0 : i32
    %c0_i32_0 = arith.constant 0 : i32
    %c0_i32_1 = arith.constant 0 : i32
    return %c0_i32, %c0_i32_0 : i32, i32
  }
  func.func @transform_3(%arg0: i32) -> (i32, i32) {
    %c0_i32 = arith.constant 0 : i32
    %c0_i32_0 = arith.constant 0 : i32
    %c0_i32_1 = arith.constant 0 : i32
    return %c0_i32, %c0_i32_0 : i32, i32
  }
  func.func @transform_4(%arg0: i32) -> (i32, i32) {
    %c0_i32 = arith.constant 0 : i32
    %c0_i32_0 = arith.constant 0 : i32
    %c0_i32_1 = arith.constant 0 : i32
    return %c0_i32, %c0_i32_0 : i32, i32
  }
  func.func @transform_5(%arg0: i32) -> (i32, i32) {
    %c0_i32 = arith.constant 0 : i32
    %c0_i32_0 = arith.constant 0 : i32
    %c0_i32_1 = arith.constant 0 : i32
    return %c0_i32, %c0_i32_0 : i32, i32
  }
  func.func @transform_6(%arg0: i32) -> (i32, i32) {
    %c0_i32 = arith.constant 0 : i32
    %c0_i32_0 = arith.constant 0 : i32
    %c0_i32_1 = arith.constant 0 : i32
    return %c0_i32, %c0_i32_0 : i32, i32
  }
  func.func @transform_7(%arg0: i32) -> (i32, i32) {
    %c0_i32 = arith.constant 0 : i32
    %c0_i32_0 = arith.constant 0 : i32
    return %arg0, %c0_i32 : i32, i32
  }
  func.func @transform_8(%arg0: i32) -> (i32, i32) {
    %c0_i32 = arith.constant 0 : i32
    %c0_i32_0 = arith.constant 0 : i32
    return %arg0, %c0_i32 : i32, i32
  }
}

</mosaic_0001>

<bundles_post_ra>
// kernel: autoencoder_forward.1
= control target key start
LH: loop header
LB: loop body
LE: loop exit
PB: predicated region body
PF: predicated region fallthrough
CT: control target
= control target key end

     0   :  { %14 = vsyncpa [#allocation3], 0  ;;  %s913_s0 = inlined_call_operand.hbm [shape: f32[8,61], index: 0, kind: input, shape index: {}]   ;;  %s914_s1 = inlined_call_operand.hbm [shape: f32[61,128], index: 1, kind: input, shape index: {}]   ;;  %s915_s2 = inlined_call_operand.vmem [shape: f32[1,128], index: 2, kind: input, shape index: {}]   ;;  %s916_s3 = inlined_call_operand.hbm [shape: f32[128,128], index: 3, kind: input, shape index: {}]   ;;  %s917_s4 = inlined_call_operand.vmem [shape: f32[1,128], index: 4, kind: input, shape index: {}]   ;;  %s918_s5 = inlined_call_operand.hbm [shape: f32[128,128], index: 5, kind: input, shape index: {}]   ;;  %s919_s6 = inlined_call_operand.vmem [shape: f32[1,128], index: 6, kind: input, shape index: {}]   ;;  %s920_s7 = inlined_call_operand.vmem [shape: f32[8,2], index: 7, kind: output, shape index: {0}]   ;;  %s921_s8 = inlined_call_operand.hbm [shape: f32[8,61], index: 8, kind: output, shape index: {1}]  }
   0x1   :  { %15 = vsyncpa [#allocation6], 0 }
   0x2   :  { %16 = vsyncpa [#allocation9], 0 }
   0x3   :  { %17 = vsyncpa [#allocation4], 0  ;;  %s745_s27 = smov [#allocation5]   ;;  %s627_s9 = scalar_lea.hbm %s914_s1, 1024 }
   0x4   :  { %s33_s28 = sshll.u32 %s745_s27, 4  ;;  %p628_p0 = scmp.ne.s32.totalorder %s914_s1, %s627_s9  ;;  %s34_s28 = int_to_ptr.vmem [resolvable:$true] %s33_s28 }
   0x5   :  { %p631_p1 = scmp.lt.u32.totalorder %s627_s9, %s914_s1 }
   0x7   :  { %p633_p2 = pnand %p631_p1, %p628_p0 }
   0x9   :  { %636 = shalt.err (!%p633_p2)
}
   0xa   :  { %s637_s14 = scalar_lea.vmem %s34_s28, 1024  ;;  %p642_p4 = scmp.lt.s32.totalorder %s34_s28, %s34_s28 }
   0xb   :  { %p638_p3 = scmp.ne.s32.totalorder %s34_s28, %s637_s14  ;;  %p643_p5 = scmp.lt.s32.totalorder %s637_s14, %s637_s14 }
   0xd   :  { %p644_p6 = por %p643_p5, %p642_p4 }
   0xf   :  { %p645_p7 = pnand %p644_p6, %p638_p3 }
  0x11   :  { %648 = shalt.err (!%p645_p7)
}
  0x12   :  { %s746_s15 = smov 128   ;;  %s747_s16 = smov 8  }
  0x13   :  { %39 = dma.hbm_to_vmem [thread:$0]  %s914_s1, 1024, %s34_s28, [#allocation6], %s746_s15, %s746_s15, %s747_s16  }
  0x14   :  { %s748_s19 = smov [#allocation2]   ;;  %s749_s21 = smov [#allocation7]  }
  0x15   :  { %s24_s20 = sshll.u32 %s748_s19, 4  ;;  %s47_s22 = sshll.u32 %s749_s21, 4  ;;  %s25_s20 = int_to_ptr.vmem [resolvable:$true] %s24_s20  ;;  %s48_s22 = int_to_ptr.vmem [resolvable:$true] %s47_s22 }
  0x16   :  { %s649_s25 = scalar_lea.hbm %s913_s0, 128 }
  0x17   :  { %p650_p8 = scmp.ne.s32.totalorder %s913_s0, %s649_s25  ;;  %p653_p9 = scmp.lt.u32.totalorder %s649_s25, %s913_s0 }
  0x19   :  { %p655_p10 = pnand %p653_p9, %p650_p8 }
  0x1b   :  { %658 = shalt.err (!%p655_p10)
}
  0x1c   :  { %s659_s1 = scalar_lea.vmem %s25_s20, 128  ;;  %p664_p12 = scmp.lt.s32.totalorder %s25_s20, %s25_s20 }
  0x1d   :  { %p660_p11 = scmp.ne.s32.totalorder %s25_s20, %s659_s1  ;;  %p665_p13 = scmp.lt.s32.totalorder %s659_s1, %s659_s1 }
  0x1f   :  { %p666_p0 = por %p665_p13, %p664_p12 }
  0x21   :  { %p667_p1 = pnand %p666_p0, %p660_p11 }
  0x23   :  { %670 = shalt.err (!%p667_p1)
}
  0x24   :  { %27 = dma.hbm_to_vmem [thread:$0]  %s913_s0, 128, %s25_s20, [#allocation3]  }
  0x25   :  { %s671_s12 = scalar_lea.hbm %s916_s3, 2048 }
  0x26   :  { %p672_p2 = scmp.ne.s32.totalorder %s916_s3, %s671_s12  ;;  %p675_p3 = scmp.lt.u32.totalorder %s671_s12, %s916_s3 }
  0x28   :  { %p677_p4 = pnand %p675_p3, %p672_p2 }
  0x2a   :  { %680 = shalt.err (!%p677_p4)
}
  0x2b   :  { %s681_s19 = scalar_lea.vmem %s48_s22, 2048  ;;  %p686_p6 = scmp.lt.s32.totalorder %s48_s22, %s48_s22 }
  0x2c   :  { %p682_p5 = scmp.ne.s32.totalorder %s48_s22, %s681_s19  ;;  %p687_p7 = scmp.lt.s32.totalorder %s681_s19, %s681_s19 }
  0x2e   :  { %p688_p8 = por %p687_p7, %p686_p6 }
  0x30   :  { %p689_p9 = pnand %p688_p8, %p682_p5 }
  0x32   :  { %692 = shalt.err (!%p689_p9)
}
  0x33   :  { %53 = dma.hbm_to_vmem [thread:$0]  %s916_s3, 2048, %s48_s22, [#allocation6], %s746_s15, %s746_s15, %s747_s16  }
  0x34   :  { %s750_s21 = smov [#allocation8]   ;;  %s693_s26 = scalar_lea.hbm %s918_s5, 2048 }
  0x35   :  { %s61_s23 = sshll.u32 %s750_s21, 4  ;;  %p694_p10 = scmp.ne.s32.totalorder %s918_s5, %s693_s26  ;;  %s62_s23 = int_to_ptr.vmem [resolvable:$true] %s61_s23 }
  0x36   :  { %p697_p11 = scmp.lt.u32.totalorder %s693_s26, %s918_s5 }
  0x38   :  { %p699_p12 = pnand %p697_p11, %p694_p10 }
  0x3a   :  { %702 = shalt.err (!%p699_p12)
}
  0x3b   :  { %s703_s28 = scalar_lea.vmem %s62_s23, 2048  ;;  %p708_p0 = scmp.lt.s32.totalorder %s62_s23, %s62_s23 }
  0x3c   :  { %p704_p13 = scmp.ne.s32.totalorder %s62_s23, %s703_s28  ;;  %p709_p1 = scmp.lt.s32.totalorder %s703_s28, %s703_s28 }
  0x3e   :  { %p710_p2 = por %p709_p1, %p708_p0 }
  0x40   :  { %p711_p3 = pnand %p710_p2, %p704_p13 }
  0x42   :  { %714 = shalt.err (!%p711_p3)
}
  0x43   :  { %67 = dma.hbm_to_vmem [thread:$0]  %s918_s5, 2048, %s62_s23, [#allocation9], %s746_s15, %s746_s15, %s747_s16  }
  0x44   :  { %737 = dma.done.wait [#allocation3], 128  }
  0x45   :  { %738 = vsyncadd [#allocation3], 4294967168 }
  0x46   :  { %739 = dma.done.wait [#allocation6], 3072  }
  0x47   :  { %740 = vsyncadd [#allocation6], 4294964224 }
  0x48   :  { %741 = dma.done.wait [#allocation9], 2048  }
  0x49   :  { %742 = vsyncadd [#allocation9], 4294965248  ;;  %v751_v0 = vmov 0.0|0.0   ;;  %vm752_vm0 = vmmov 0   ;;  %v753_v1 = vmov 0.0   ;;  %v83_v2 = vld [vmem:[#allocation5] sm:$0xff] }
  0x4a   :  { %550 = vmatprep.subr.bf16.mxu0 %v751_v0  ;;  %563 = vmatprep.subr.bf16.mxu1 %v751_v0  ;;  %v84_v3 = vld [vmem:[#allocation5 + $0x8] sm:$0xff]  ;;  %v85_v4 = vld [vmem:[#allocation5 + $0x10] sm:$0xff]  ;;  %v86_v6 = vld [vmem:[#allocation5 + $0x18] sm:$0xff]  ;;  %vm102_vm1 = vcmask 1044480   ;;  %vm754_vm2 = vmmov 1   ;;  %vm98_vm4 = vcmask 498688  }
  0x4b   :  { %477 = vmatprep.mubr.msk.f32.mxu0 %vm752_vm0, %v753_v1  ;;  %512 = vmatprep.mubr.msk.f32.mxu1 %vm752_vm0, %v753_v1  ;;  %v551_v5 = vpack.c.bf16 %v84_v3, %v83_v2  ;;  %v554_v7 = vpack.c.bf16 %v86_v6, %v85_v4  ;;  %v180_v8 = vld [vmem:[#allocation7] sm:$0xff]  ;;  %v181_v9 = vld [vmem:[#allocation7 + $0x8] sm:$0xff]  ;;  %v182_v10 = vld [vmem:[#allocation7 + $0x10] sm:$0xff]  ;;  %s755_s10 = smov [#allocation10]   ;;  %s756_s12 = smov 64  }
  0x4c   :  { %v87_v11 = vld [vmem:[#allocation5 + $0x20] sm:$0xff]  ;;  %v88_v12 = vld [vmem:[#allocation5 + $0x28] sm:$0xff]  ;;  %v564_v13 = vpack.c.bf16 %v181_v9, %v180_v8  ;;  %v183_v14 = vld [vmem:[#allocation7 + $0x18] sm:$0xff]  ;;  %s398_s11 = sshll.u32 %s755_s10, 4  ;;  %s399_s11 = int_to_ptr.vmem [resolvable:$true] %s398_s11 }
  0x4d   :  { %552 = vmatpush3.bf16.msra.mxu0 %v551_v5  ;;  %v567_v15 = vpack.c.bf16 %v183_v14, %v182_v10  ;;  %v557_v16 = vpack.c.bf16 %v88_v12, %v87_v11  ;;  %v184_v17 = vld [vmem:[#allocation7 + $0x20] sm:$0xff]  ;;  %v185_v18 = vld [vmem:[#allocation7 + $0x28] sm:$0xff]  ;;  %v89_v19 = vld [vmem:[#allocation5 + $0x30] sm:$0xff]  ;;  %v277_v14 = vlaneseq  ;;  %s715_s13 = scalar_lea.vmem %s399_s11, 128  ;;  %p720_p5 = scmp.lt.s32.totalorder %s399_s11, %s399_s11 }
  0x4e   :  { %553 = vmatprep.subr.bf16.mxu0 %v751_v0  ;;  %565 = vmatpush3.bf16.msra.mxu1 %v564_v13  ;;  %v90_v20 = vld [vmem:[#allocation5 + $0x38] sm:$0x1f]  ;;  %v570_v21 = vpack.c.bf16 %v185_v18, %v184_v17  ;;  %vm561_vm3 = vmpackc.low %vm102_vm1, %vm754_vm2  ;;  %v186_v24 = vld [vmem:[#allocation7 + $0x30] sm:$0xff]  ;;  %p716_p4 = scmp.ne.s32.totalorder %s399_s11, %s715_s13  ;;  %p721_p6 = scmp.lt.s32.totalorder %s715_s13, %s715_s13 }
  0x4f   :  { %566 = vmatprep.subr.bf16.mxu1 %v751_v0  ;;  %v560_v22 = vpack.c.bf16 %v90_v20, %v89_v19  ;;  %v82_v23 = vld [vmem:[#allocation2] sm:$0xff]  ;;  %v188_v27 = vld [vmem:[#allocation7 + $0x40] sm:$0xff]  ;;  %v189_v28 = vld [vmem:[#allocation7 + $0x48] sm:$0xff] }
  0x50   :  { %v187_v25 = vld [vmem:[#allocation7 + $0x38] sm:$0xff]  ;;  %v576_v29 = vpack.c.bf16 %v189_v28, %v188_v27  ;;  %v190_v30 = vld [vmem:[#allocation7 + $0x50] sm:$0xff]  ;;  %v192_v33 = vld [vmem:[#allocation7 + $0x60] sm:$0xff]  ;;  %p722_p7 = por %p721_p6, %p720_p5 }
  0x51   :  { %555 = vmatpush3.bf16.msra.mxu0 %v554_v7  ;;  %v573_v26 = vpack.c.bf16 %v187_v25, %v186_v24  ;;  %v191_v31 = vld [vmem:[#allocation7 + $0x58] sm:$0xff]  ;;  %v193_v34 = vld [vmem:[#allocation7 + $0x68] sm:$0xff]  ;;  %v194_v36 = vld [vmem:[#allocation7 + $0x70] sm:$0xff] }
  0x52   :  { %556 = vmatprep.subr.bf16.mxu0 %v751_v0  ;;  %568 = vmatpush3.bf16.msra.mxu1 %v567_v15  ;;  %v579_v32 = vpack.c.bf16 %v191_v31, %v190_v30  ;;  %v582_v35 = vpack.c.bf16 %v193_v34, %v192_v33  ;;  %v195_v37 = vld [vmem:[#allocation7 + $0x78] sm:$0xff]  ;;  %v290_v39 = vld [vmem:[#allocation8] sm:$0xff]  ;;  %v291_v40 = vld [vmem:[#allocation8 + $0x8] sm:$0xff]  ;;  %v278_v15 = vand.u32 127, %v277_v14  ;;  %p723_p8 = pnand %p722_p7, %p716_p4 }
  0x53   :  { %569 = vmatprep.subr.bf16.mxu1 %v751_v0  ;;  %v585_v38 = vpack.c.bf16 %v195_v37, %v194_v36  ;;  %v292_v41 = vld [vmem:[#allocation8 + $0x10] sm:$0xff]  ;;  %v588_v42 = vpack.c.bf16 %v291_v40, %v290_v39  ;;  %v293_v43 = vld [vmem:[#allocation8 + $0x18] sm:$0xff]  ;;  %v294_v53 = vld [vmem:[#allocation8 + $0x20] sm:$0xff] }
  0x54   :  { %v591_v44 = vpack.c.bf16 %v293_v43, %v292_v41  ;;  %v411_v45 = vld [vmem:[%s915_s2] ss:$0 sm:$0xff]  ;;  %v295_v54 = vld [vmem:[#allocation8 + $0x28] sm:$0xff]  ;;  %v296_v56 = vld [vmem:[#allocation8 + $0x30] sm:$0xff]  ;;  %vm282_vm5 = vcmp.ge.s32.totalorder %v278_v15, 32  ;;  %vm283_vm6 = vcmp.lt.s32.totalorder %v278_v15, 64 }
  0x55   :  { %558 = vmatpush3.bf16.msra.mxu0 %v557_v16  ;;  %v594_v55 = vpack.c.bf16 %v295_v54, %v294_v53  ;;  %v297_v57 = vld [vmem:[#allocation8 + $0x38] sm:$0xff]  ;;  %v298_v59 = vld [vmem:[#allocation8 + $0x40] sm:$0xff]  ;;  %v299_v60 = vld [vmem:[#allocation8 + $0x48] sm:$0xff]  ;;  %vm279_vm7 = vcmp.lt.s32.totalorder %v278_v15, 32 }
  0x56   :  { %559 = vmatprep.subr.bf16.mxu0 %v751_v0  ;;  %571 = vmatpush3.bf16.msra.mxu1 %v570_v21  ;;  %v597_v58 = vpack.c.bf16 %v297_v57, %v296_v56  ;;  %v600_v61 = vpack.c.bf16 %v299_v60, %v298_v59  ;;  %v300_v62 = vld [vmem:[#allocation8 + $0x50] sm:$0xff]  ;;  %v301_v63 = vld [vmem:[#allocation8 + $0x58] sm:$0xff]  ;;  %v302_v3 = vld [vmem:[#allocation8 + $0x60] sm:$0xff]  ;;  %v415_v17 = vsel %vm279_vm7, 1.0, %v753_v1 }
  0x57   :  { %572 = vmatprep.subr.bf16.mxu1 %v751_v0  ;;  %v603_v2 = vpack.c.bf16 %v301_v63, %v300_v62  ;;  %v303_v4 = vld [vmem:[#allocation8 + $0x68] sm:$0xff]  ;;  %v304_v6 = vld [vmem:[#allocation8 + $0x70] sm:$0xff]  ;;  %v305_v7 = vld [vmem:[#allocation8 + $0x78] sm:$0xff] }
  0x58   :  { %v606_v5 = vpack.c.bf16 %v303_v4, %v302_v3  ;;  %v609_v8 = vpack.c.bf16 %v305_v7, %v304_v6  ;;  %v414_v9 = vld [vmem:[%s917_s4] ss:$0 sm:$0xff]  ;;  %vm284_vm8 = vmand %vm282_vm5, %vm283_vm6 }
  0x59   :  { %562 = vmatpush3.bf16.msk.msra.mxu0 %vm561_vm3, %v560_v22  ;;  %v416_v18 = vsel %vm284_vm8, 1.0, %v753_v1 }
  0x5a   :  { %587 = vmatprep.subr.bf16.mxu0 %v751_v0  ;;  %574 = vmatpush3.bf16.msra.mxu1 %v573_v26 }
  0x5b   :  { %575 = vmatprep.subr.bf16.mxu1 %v751_v0 }
  0x5c   :  { %478 = vmatmul.mubr.msk.f32.vlgmr.msra.gmra.mrb[0].mxu0 %vm98_vm4, %v82_v23  ;;  %v417_v23 = vld [vmem:[%s919_s6] ss:$0 sm:$0xff] }
  0x5d   :  { %547 = vmatprep.mubr.msk.f32.mxu0 %vm752_vm0, %v753_v1  ;;  %589 = vmatpush3.bf16.msra.mxu0 %v588_v42 }
  0x5e   :  { %577 = vmatpush3.bf16.msra.mxu1 %v576_v29  ;;  %590 = vmatprep.subr.bf16.mxu0 %v751_v0 }
  0x5f   :  { %578 = vmatprep.subr.bf16.mxu1 %v751_v0 }
  0x61   :  { %592 = vmatpush3.bf16.msra.mxu0 %v591_v44 }
  0x62   :  { %580 = vmatpush3.bf16.msra.mxu1 %v579_v32  ;;  %593 = vmatprep.subr.bf16.mxu0 %v751_v0 }
  0x63   :  { %581 = vmatprep.subr.bf16.mxu1 %v751_v0 }
  0x65   :  { %595 = vmatpush3.bf16.msra.mxu0 %v594_v55 }
  0x66   :  { %583 = vmatpush3.bf16.msra.mxu1 %v582_v35  ;;  %596 = vmatprep.subr.bf16.mxu0 %v751_v0 }
  0x67   :  { %584 = vmatprep.subr.bf16.mxu1 %v751_v0 }
  0x69   :  { %598 = vmatpush3.bf16.msra.mxu0 %v597_v58 }
  0x6a   :  { %586 = vmatpush3.bf16.msra.mxu1 %v585_v38  ;;  %599 = vmatprep.subr.bf16.mxu0 %v751_v0 }
  0x6d   :  { %601 = vmatpush3.bf16.msra.mxu0 %v600_v61 }
  0x6e   :  { %602 = vmatprep.subr.bf16.mxu0 %v751_v0 }
  0x71   :  { %604 = vmatpush3.bf16.msra.mxu0 %v603_v2 }
  0x72   :  { %605 = vmatprep.subr.bf16.mxu0 %v751_v0 }
  0x75   :  { %607 = vmatpush3.bf16.msra.mxu0 %v606_v5 }
  0x76   :  { %608 = vmatprep.subr.bf16.mxu0 %v751_v0 }
  0x79   :  { %610 = vmatpush3.bf16.msra.mxu0 %v609_v8 }
 0x12f   :  { %v172_v46 = vpop.f32.mrb[0].mxu0 }
 0x130   :  { %v173_v47 = vadd.f32 %v411_v45, %v172_v46  ;;  %v479_v48 = vpop.f32.mrb[1].mxu0 }
 0x132   :  { %v176_v49 = vmul.f32 0.5, %v173_v47 }
 0x134   :  { %623 = vtanh.f32 %v176_v49 }
 0x13e   :  { %v624_v50 = vpop.eup %623 }
 0x13f   :  { %v178_v51 = vmul.f32 0.5, %v624_v50 }
 0x141   :  { %v179_v52 = vadd.f32 0.5, %v178_v51 }
 0x143   :  { %513 = vmatmul.mubr.f32.vlgmr.msra.gmra.mrb[0].mxu1 %v179_v52  ;;  %v287_v20 = vmul.f32 %v415_v17, %v179_v52 }
 0x216   :  { %v269_v10 = vpop.f32.mrb[0].mxu1 }
 0x217   :  { %v270_v11 = vadd.f32 %v414_v9, %v269_v10  ;;  %v514_v12 = vpop.f32.mrb[1].mxu1 }
 0x219   :  { %v273_v13 = vmul.f32 0.5, %v270_v11 }
 0x21b   :  { %625 = vtanh.f32 %v273_v13 }
 0x225   :  { %v626_v0 = vpop.eup %625 }
 0x226   :  { %v275_v16 = vmul.f32 0.5, %v626_v0 }
 0x228   :  { %v276_v19 = vadd.f32 0.5, %v275_v16 }
 0x22a   :  { %v288_v21 = vmul.f32 %v416_v18, %v276_v19 }
 0x22c   :  { %v289_v22 = vadd.f32 %v288_v21, %v287_v20 }
 0x22e   :  { %548 = vmatmul.mubr.f32.vlgmr.msra.gmra.mrb[2].mxu0 %v289_v22 }
 0x301   :  { %v379_v24 = vpop.f32.mrb[2].mxu0 }
 0x302   :  { %v380_v25 = vadd.f32 %v417_v23, %v379_v24  ;;  %v549_v26 = vpop.f32.mrb[3].mxu0 }
 0x304   :  { %383 = vst.msk [vmem:[#allocation10] sm:$0xff] %vm98_vm4, %v380_v25  ;;  %385 = vrot.lane.b32.xlu0 %v380_v25, %s756_s12 }
 0x305   :  { %726 = shalt.err (!%p723_p8)
}
 0x306   :  { %s727_s6 = scalar_lea.hbm %s921_s8, 128 }
 0x307   :  { %p728_p9 = scmp.ne.s32.totalorder %s921_s8, %s727_s6  ;;  %p731_p10 = scmp.lt.u32.totalorder %s727_s6, %s921_s8 }
 0x309   :  { %p733_p11 = pnand %p731_p10, %p728_p9 }
 0x30b   :  { %736 = shalt.err (!%p733_p11)
}
 0x30c   :  { %401 = dma.vmem_to_hbm [thread:$0]  %s399_s11, 128, %s921_s8, [#allocation4]   ;;  %vm388_vm9 = vcmask 15360  }
 0x376   :  { %v386_v1 = vpop.permute.xlu0 %385 }
 0x377   :  { %389 = vst.msk [vmem:[%s920_s7] sm:$0xff] %vm388_vm9, %v386_v1 }
 0x378   :  { %743 = dma.done.wait [#allocation4], 128  }
 0x379   :  { %744 = vsyncadd [#allocation4], 4294967168 }
 0x37a   :  { %407 = vsyncpa [#allocation3], 1 }
 0x37b   :  { %408 = vsyncpa [#allocation6], 1 }
 0x37c   :  { %409 = vsyncpa [#allocation9], 1 }
 0x37d   :  { %410 = vsyncpa [#allocation4], 1 }

</bundles_post_ra>
